<compile_context>
chip_gen: v7x
topology: tpu7x:2x2x1
jax: 0.10.0
libtpu: 0.0.40
codegen_flags: <defaults>
</compile_context>

<pallas_src>
import functools

import jax
import jax.numpy as jnp
from jax.experimental import pallas as pl
from jax.experimental.pallas import tpu as pltpu

EPS = 1e-5
LANE = 128
SUBLANE = 8
# Conservative pipelined-buffer budget: fits v7x's 64 MiB/TC with headroom.
# On v5e/v6e (128 MiB VMEM) callers may pass vmem_budget_bytes=96<<20.
DEFAULT_VMEM_BUDGET = 48 << 20


def _round_down(x, m):
    return (x // m) * m


def _round_up(x, m):
    return ((x + m - 1) // m) * m


# ---------------------------------------------------------------------------
# Fast path: the whole batch fits in one (B, tile) block per feature tile.
# ---------------------------------------------------------------------------
def _bnflow_fused_kernel(x_ref, lg_ref, beta_ref, y_ref, var_ref):
    x = x_ref[...].astype(jnp.float32)          # (B, tile)
    lg = lg_ref[...].astype(jnp.float32)        # (1, tile)
    beta = beta_ref[...].astype(jnp.float32)    # (1, tile)

    # Centered two-pass batch statistics (numerically stable), per feature.
    mean = jnp.mean(x, axis=0, keepdims=True)                          # (1, tile)
    centered = x - mean
    var = jnp.mean(centered * centered, axis=0, keepdims=True) + EPS   # (1, tile)

    # Fused affine: y = x * scale + shift  (exp/rsqrt on (1,tile) -> EUP, cheap)
    scale = jnp.exp(lg) * jax.lax.rsqrt(var)                           # (1, tile)
    shift = beta - scale * mean                                        # (1, tile)

    y_ref[...] = (x * scale + shift).astype(y_ref.dtype)
    var_ref[...] = var


# ---------------------------------------------------------------------------
# Large-B fallback: pass 1 — per-feature sum / sum-of-squares over batch tiles.
# ---------------------------------------------------------------------------
def _stats_kernel(x_ref, mean_ref, var_ref, *, batch, tile_b, n_b):
    b = pl.program_id(1)

    @pl.when(b == 0)
    def _():
        mean_ref[...] = jnp.zeros_like(mean_ref)
        var_ref[...] = jnp.zeros_like(var_ref)

    x = x_ref[...].astype(jnp.float32)                                  # (tile_b, tile)
    # Mask overhanging batch rows (OOB reads are unspecified data).
    row = jax.lax.broadcasted_iota(jnp.int32, x.shape, 0)
    valid = row < (batch - b * tile_b)
    xm = jnp.where(valid, x, 0.0)

    mean_ref[...] += jnp.sum(xm, axis=0, keepdims=True)                 # running sum
    var_ref[...] += jnp.sum(xm * xm, axis=0, keepdims=True)             # running sumsq

    @pl.when(b == n_b - 1)
    def _():
        inv_n = 1.0 / batch
        m = mean_ref[...] * inv_n
        v = var_ref[...] * inv_n - m * m + EPS
        mean_ref[...] = m
        var_ref[...] = v


# Large-B fallback: pass 2 — streaming y = x * scale + shift.
def _affine_kernel(x_ref, scale_ref, shift_ref, y_ref):
    x = x_ref[...].astype(jnp.float32)
    y_ref[...] = (x * scale_ref[...] + shift_ref[...]).astype(y_ref.dtype)


# ---------------------------------------------------------------------------
# Wrapper
# ---------------------------------------------------------------------------
def batch_norm_flow_direct(x, log_gamma, beta, *, tile_d=None, vmem_budget_bytes=None):
    """x: (B, D). log_gamma, beta: (D,). Returns (y: (B, D), logdet: (1,))
    matching the PyTorch module (mode='direct', training=True)."""
    B, D = x.shape
    d_ceil = _round_up(max(D, 1), LANE)
    budget = DEFAULT_VMEM_BUDGET if vmem_budget_bytes is None else int(vmem_budget_bytes)

    lg2d = log_gamma.reshape(1, D)
    beta2d = beta.reshape(1, D)

    # Bytes of pipelined VMEM per feature-lane on the fast path:
    # x + y blocks, each double-buffered, stats in f32 inside the kernel.
    per_lane = 4 * B * 4
    tile_auto = _round_down(budget // per_lane, LANE)

    if tile_auto >= LANE:
        # ----------------------- fast path (single batch block) -------------
        if tile_d is not None:
            tile = max(LANE, min(_round_down(tile_d, LANE), d_ceil))
        else:
            tile = min(tile_auto, d_ceil)
        n_d = pl.cdiv(D, tile)

        needed = 4 * B * tile * 4 + 6 * SUBLANE * tile * 4
        vmem_limit = int(min(max(needed + (8 << 20), 16 << 20), budget + (16 << 20)))

        y, var2d = pl.pallas_call(
            _bnflow_fused_kernel,
            out_shape=(
                jax.ShapeDtypeStruct((B, D), x.dtype),
                jax.ShapeDtypeStruct((1, D), jnp.float32),
            ),
            grid_spec=pltpu.PrefetchScalarGridSpec(
                num_scalar_prefetch=0,
                grid=(n_d,),
                in_specs=[
                    pl.BlockSpec((B, tile), lambda j: (0, j)),
                    pl.BlockSpec((1, tile), lambda j: (0, j)),
                    pl.BlockSpec((1, tile), lambda j: (0, j)),
                ],
                out_specs=[
                    pl.BlockSpec((B, tile), lambda j: (0, j)),
                    pl.BlockSpec((1, tile), lambda j: (0, j)),
                ],
            ),
            compiler_params=pltpu.CompilerParams(
                dimension_semantics=(pltpu.PARALLEL,),
                vmem_limit_bytes=vmem_limit,
            ),
        )(x, lg2d, beta2d)
        var = var2d[0]
    else:
        # ----------------- large-B two-pass fallback (2-D grid) -------------
        if tile_d is not None:
            tile = max(LANE, min(_round_down(tile_d, LANE), d_ceil))
        else:
            tile = min(512, d_ceil)
        tile_b = _round_down(budget // (16 * tile), SUBLANE)
        tile_b = max(SUBLANE, min(tile_b, _round_up(B, SUBLANE)))
        n_d = pl.cdiv(D, tile)
        n_b = pl.cdiv(B, tile_b)

        needed_s = 2 * tile_b * tile * 4 + 4 * SUBLANE * tile * 4
        needed_n = 4 * tile_b * tile * 4 + 6 * SUBLANE * tile * 4
        vmem_limit_s = int(min(max(needed_s + (8 << 20), 16 << 20), budget + (16 << 20)))
        vmem_limit_n = int(min(max(needed_n + (8 << 20), 16 << 20), budget + (16 << 20)))

        mean2d, var2d = pl.pallas_call(
            functools.partial(_stats_kernel, batch=B, tile_b=tile_b, n_b=n_b),
            out_shape=(
                jax.ShapeDtypeStruct((1, D), jnp.float32),
                jax.ShapeDtypeStruct((1, D), jnp.float32),
            ),
            grid_spec=pltpu.PrefetchScalarGridSpec(
                num_scalar_prefetch=0,
                grid=(n_d, n_b),                       # reduction (B) axis last
                in_specs=[pl.BlockSpec((tile_b, tile), lambda j, b: (b, j))],
                out_specs=[
                    pl.BlockSpec((1, tile), lambda j, b: (0, j)),
                    pl.BlockSpec((1, tile), lambda j, b: (0, j)),
                ],
            ),
            compiler_params=pltpu.CompilerParams(
                dimension_semantics=(pltpu.PARALLEL, pltpu.ARBITRARY),
                vmem_limit_bytes=vmem_limit_s,
            ),
        )(x)
        mean = mean2d[0]
        var = var2d[0]

        # Tiny (D,)-sized math in plain JAX.
        scale = (jnp.exp(log_gamma) * jax.lax.rsqrt(var)).astype(jnp.float32)
        shift = (beta - scale * mean).astype(jnp.float32)

        y = pl.pallas_call(
            _affine_kernel,
            out_shape=jax.ShapeDtypeStruct((B, D), x.dtype),
            grid_spec=pltpu.PrefetchScalarGridSpec(
                num_scalar_prefetch=0,
                grid=(n_d, n_b),
                in_specs=[
                    pl.BlockSpec((tile_b, tile), lambda j, b: (b, j)),
                    pl.BlockSpec((1, tile), lambda j, b: (0, j)),
                    pl.BlockSpec((1, tile), lambda j, b: (0, j)),
                ],
                out_specs=pl.BlockSpec((tile_b, tile), lambda j, b: (b, j)),
            ),
            compiler_params=pltpu.CompilerParams(
                dimension_semantics=(pltpu.PARALLEL, pltpu.PARALLEL),
                vmem_limit_bytes=vmem_limit_n,
            ),
        )(x, scale.reshape(1, D), shift.reshape(1, D))

    # logdet over the tiny (D,) var vector (keeps the grid axes parallel).
    logdet = jnp.sum(log_gamma - 0.5 * jnp.log(var), axis=-1, keepdims=True)
    return y, logdet


def _reference(x, log_gamma, beta):
    mean = x.mean(0)
    var = ((x - mean) ** 2).mean(0) + EPS
    y = jnp.exp(log_gamma) * (x - mean) / jnp.sqrt(var) + beta
    logdet = jnp.sum(log_gamma - 0.5 * jnp.log(var), -1, keepdims=True)
    return y, logdet


if __name__ == "__main__":
    # Case 1: module-sized toy problem (batch=8, num_inputs=32), zero-init params.
    key = jax.random.PRNGKey(0)
    B, D = 8, 32
    x = jax.random.normal(key, (B, D), dtype=jnp.float32)
    log_gamma = jnp.zeros((D,), dtype=jnp.float32)
    beta = jnp.zeros((D,), dtype=jnp.float32)

    y, logdet = batch_norm_flow_direct(x, log_gamma, beta)
    jax.block_until_ready((y, logdet))
    y_ref, ld_ref = _reference(x, log_gamma, beta)
    assert y.shape == (B, D) and logdet.shape == (1,)
    assert jnp.allclose(y, y_ref, atol=1e-5)
    assert jnp.allclose(logdet, ld_ref, atol=1e-5)

    # Case 2: ragged feature dim (D=300) + multi-tile, no wrapper pad/slice of x.
    B2, D2 = 16, 300
    k1, k2, k3 = jax.random.split(jax.random.PRNGKey(1), 3)
    x2 = jax.random.normal(k1, (B2, D2), dtype=jnp.float32)
    lg2 = 0.1 * jax.random.normal(k2, (D2,), dtype=jnp.float32)
    b2 = 0.1 * jax.random.normal(k3, (D2,), dtype=jnp.float32)

    y2, ld2 = batch_norm_flow_direct(x2, lg2, b2, tile_d=128)
    jax.block_until_ready((y2, ld2))
    y2_ref, ld2_ref = _reference(x2, lg2, b2)
    assert y2.shape == (B2, D2) and ld2.shape == (1,)
    assert jnp.allclose(y2, y2_ref, atol=1e-5)
    assert jnp.allclose(ld2, ld2_ref, atol=1e-4)

    # Case 3: force the large-B two-pass path with a tiny VMEM budget
    # (exercises batch tiling, row masking, and the streaming affine pass).
    B3, D3 = 260, 200
    k4, k5, k6 = jax.random.split(jax.random.PRNGKey(2), 3)
    x3 = jax.random.normal(k4, (B3, D3), dtype=jnp.float32)
    lg3 = 0.1 * jax.random.normal(k5, (D3,), dtype=jnp.float32)
    b3 = 0.1 * jax.random.normal(k6, (D3,), dtype=jnp.float32)

    y3, ld3 = batch_norm_flow_direct(x3, lg3, b3, vmem_budget_bytes=256 << 10)
    jax.block_until_ready((y3, ld3))
    y3_ref, ld3_ref = _reference(x3, lg3, b3)
    assert y3.shape == (B3, D3) and ld3.shape == (1,)
    assert jnp.allclose(y3, y3_ref, atol=3e-4)
    assert jnp.allclose(ld3, ld3_ref, atol=1e-3)

    print("KERNEL_OK")
</pallas_src>

<mosaic_0001>
module attributes {stable_mosaic.version = 11 : i64} {
  func.func @_bnflow_fused_kernel(%arg0: i32, %arg1: memref<8x128xf32, #tpu.memory_space<vmem>>, %arg2: memref<1x128xf32, #tpu.memory_space<vmem>>, %arg3: memref<1x128xf32, #tpu.memory_space<vmem>>, %arg4: memref<8x128xf32, #tpu.memory_space<vmem>>, %arg5: memref<1x128xf32, #tpu.memory_space<vmem>>) attributes {dimension_semantics = [#tpu.dimension_semantics<parallel>], iteration_bounds = array<i64: 1>, scalar_prefetch = 0 : i64, scratch_operands = 0 : i64, tpu.core_type = #tpu.core_type<tc>, window_params = [{transform_indices = @transform_0, window_bounds = array<i64: 8, 128>}, {transform_indices = @transform_1, window_bounds = array<i64: 1, 128>}, {transform_indices = @transform_2, window_bounds = array<i64: 1, 128>}, {transform_indices = @transform_3, window_bounds = array<i64: 8, 128>}, {transform_indices = @transform_4, window_bounds = array<i64: 1, 128>}]} {
    %c0 = arith.constant 0 : index
    %c0_0 = arith.constant 0 : index
    %0 = vector.load %arg1[%c0, %c0_0] : memref<8x128xf32, #tpu.memory_space<vmem>>, vector<8x128xf32>
    %c0_1 = arith.constant 0 : index
    %c0_2 = arith.constant 0 : index
    %1 = vector.load %arg2[%c0_1, %c0_2] : memref<1x128xf32, #tpu.memory_space<vmem>>, vector<1x128xf32>
    %c0_3 = arith.constant 0 : index
    %c0_4 = arith.constant 0 : index
    %2 = vector.load %arg3[%c0_3, %c0_4] : memref<1x128xf32, #tpu.memory_space<vmem>>, vector<1x128xf32>
    %cst = arith.constant dense<0.000000e+00> : vector<128xf32>
    %3 = vector.multi_reduction <add>, %0, %cst [0] : vector<8x128xf32> to vector<128xf32>
    %4 = vector.shape_cast %3 : vector<128xf32> to vector<1x128xf32>
    %cst_5 = arith.constant 8.000000e+00 : f32
    %5 = vector.broadcast %cst_5 : f32 to vector<1x128xf32>
    %6 = arith.divf %4, %5 : vector<1x128xf32>
    %7 = vector.broadcast %6 : vector<1x128xf32> to vector<8x128xf32>
    %8 = arith.subf %0, %7 : vector<8x128xf32>
    %9 = arith.mulf %8, %8 : vector<8x128xf32>
    %cst_6 = arith.constant dense<0.000000e+00> : vector<128xf32>
    %10 = vector.multi_reduction <add>, %9, %cst_6 [0] : vector<8x128xf32> to vector<128xf32>
    %11 = vector.shape_cast %10 : vector<128xf32> to vector<1x128xf32>
    %cst_7 = arith.constant 8.000000e+00 : f32
    %12 = vector.broadcast %cst_7 : f32 to vector<1x128xf32>
    %13 = arith.divf %11, %12 : vector<1x128xf32>
    %cst_8 = arith.constant 9.99999974E-6 : f32
    %14 = vector.broadcast %cst_8 : f32 to vector<1x128xf32>
    %15 = arith.addf %13, %14 : vector<1x128xf32>
    %16 = math.exp %1 : vector<1x128xf32>
    %17 = math.rsqrt %15 : vector<1x128xf32>
    %18 = arith.mulf %16, %17 : vector<1x128xf32>
    %19 = arith.mulf %18, %6 : vector<1x128xf32>
    %20 = arith.subf %2, %19 : vector<1x128xf32>
    %21 = vector.broadcast %18 : vector<1x128xf32> to vector<8x128xf32>
    %22 = arith.mulf %0, %21 : vector<8x128xf32>
    %23 = vector.broadcast %20 : vector<1x128xf32> to vector<8x128xf32>
    %24 = arith.addf %22, %23 : vector<8x128xf32>
    %c0_9 = arith.constant 0 : index
    %c0_10 = arith.constant 0 : index
    %25 = vector.load %arg4[%c0_9, %c0_10] : memref<8x128xf32, #tpu.memory_space<vmem>>, vector<8x128xf32>
    tpu.vector_store %arg4[%c0_9, %c0_10], %24 {strides = array<i32>} : memref<8x128xf32, #tpu.memory_space<vmem>>, vector<8x128xf32>,
    %c0_11 = arith.constant 0 : index
    %c0_12 = arith.constant 0 : index
    %26 = vector.load %arg5[%c0_11, %c0_12] : memref<1x128xf32, #tpu.memory_space<vmem>>, vector<1x128xf32>
    tpu.vector_store %arg5[%c0_11, %c0_12], %15 {strides = array<i32>} : memref<1x128xf32, #tpu.memory_space<vmem>>, vector<1x128xf32>,
    return
  }
  func.func @transform_0(%arg0: i32) -> (i32, i32) {
    %c0_i32 = arith.constant 0 : i32
    %c0_i32_0 = arith.constant 0 : i32
    return %c0_i32, %arg0 : i32, i32
  }
  func.func @transform_1(%arg0: i32) -> (i32, i32) {
    %c0_i32 = arith.constant 0 : i32
    %c0_i32_0 = arith.constant 0 : i32
    return %c0_i32, %arg0 : i32, i32
  }
  func.func @transform_2(%arg0: i32) -> (i32, i32) {
    %c0_i32 = arith.constant 0 : i32
    %c0_i32_0 = arith.constant 0 : i32
    return %c0_i32, %arg0 : i32, i32
  }
  func.func @transform_3(%arg0: i32) -> (i32, i32) {
    %c0_i32 = arith.constant 0 : i32
    %c0_i32_0 = arith.constant 0 : i32
    return %c0_i32, %arg0 : i32, i32
  }
  func.func @transform_4(%arg0: i32) -> (i32, i32) {
    %c0_i32 = arith.constant 0 : i32
    %c0_i32_0 = arith.constant 0 : i32
    return %c0_i32, %arg0 : i32, i32
  }
}

</mosaic_0001>

<bundles_post_ra>
// kernel: tpu_custom_call.1
= control target key start
LH: loop header
LB: loop body
LE: loop exit
PB: predicated region body
PF: predicated region fallthrough
CT: control target
= control target key end

     0   :  { %10 = vsyncpa [#allocation3], 0  ;;  %s251_s0 = inlined_call_operand.hbm [shape: f32[8,32], index: 0, kind: input, shape index: {}]   ;;  %s252_s1 = inlined_call_operand.vmem [shape: f32[1,32], index: 1, kind: input, shape index: {}]   ;;  %s253_s2 = inlined_call_operand.vmem [shape: f32[1,32], index: 2, kind: input, shape index: {}]   ;;  %s254_s3 = inlined_call_operand.hbm [shape: f32[8,32], index: 3, kind: output, shape index: {0}]   ;;  %s255_s4 = inlined_call_operand.hbm [shape: f32[1,32], index: 4, kind: output, shape index: {1}]  }
   0x1   :  { %11 = vsyncpa [#allocation4], 0 }
   0x2   :  { %12 = vsyncpa [#allocation7], 0  ;;  %s181_s15 = smov [#allocation2]   ;;  %s109_s19 = scalar_lea.hbm %s251_s0, 128 }
   0x3   :  { %s19_s16 = sshll.u32 %s181_s15, 4  ;;  %p110_p0 = scmp.ne.s32.totalorder %s251_s0, %s109_s19  ;;  %s20_s16 = int_to_ptr.vmem [resolvable:$true] %s19_s16 }
   0x4   :  { %p113_p1 = scmp.lt.u32.totalorder %s109_s19, %s251_s0 }
   0x6   :  { %p115_p2 = pnand %p113_p1, %p110_p0 }
   0x8   :  { %118 = shalt.err (!%p115_p2)
}
   0x9   :  { %s119_s24 = scalar_lea.vmem %s20_s16, 128  ;;  %p124_p4 = scmp.lt.s32.totalorder %s20_s16, %s20_s16 }
   0xa   :  { %p120_p3 = scmp.ne.s32.totalorder %s20_s16, %s119_s24  ;;  %p125_p5 = scmp.lt.s32.totalorder %s119_s24, %s119_s24 }
   0xc   :  { %p126_p6 = por %p125_p5, %p124_p4 }
   0xe   :  { %p127_p7 = pnand %p126_p6, %p120_p3 }
  0x10   :  { %130 = shalt.err (!%p127_p7)
}
  0x11   :  { %22 = dma.hbm_to_vmem [thread:$0]  %s251_s0, 128, %s20_s16, [#allocation3]  }
  0x12   :  { %175 = dma.done.wait [#allocation3], 128  }
  0x13   :  { %176 = vsyncadd [#allocation3], 4294967168  ;;  %v30_v0 = vld [vmem:[#allocation2] sm:$0xff]  ;;  %s182_s0 = smov [#allocation6]   ;;  %v58_v20 = vlaneseq }
  0x14   :  { %v33_v1 = vrot.slane %v30_v0, 4  ;;  %v31_v14 = vld [vmem:[%s252_s1] sm:$0x1]  ;;  %s89_s29 = sshll.u32 %s182_s0, 4  ;;  %s90_s29 = int_to_ptr.vmem [resolvable:$true] %s89_s29 }
  0x15   :  { %v51_v17 = vmul.f32 1.442695, %v31_v14  ;;  %s131_s30 = scalar_lea.vmem %s90_s29, 16  ;;  %s135_s5 = scalar_lea.vmem %s90_s29, 32 }
  0x16   :  { %v34_v2 = vadd.f32 %v33_v1, %v30_v0  ;;  %p132_p8 = scmp.ne.s32.totalorder %s90_s29, %s131_s30  ;;  %p136_p9 = scmp.lt.s32.totalorder %s90_s29, %s90_s29 }
  0x17   :  { %105 = vpow2.f32 %v51_v17  ;;  %p137_p10 = scmp.lt.s32.totalorder %s135_s5, %s131_s30 }
  0x18   :  { %v35_v3 = vrot.slane %v34_v2, 2 }
  0x19   :  { %p138_p11 = por %p137_p10, %p136_p9 }
  0x1a   :  { %v36_v4 = vadd.f32 %v35_v3, %v34_v2 }
  0x1b   :  { %p139_p12 = pnand %p138_p11, %p132_p8 }
  0x1c   :  { %v37_v5 = vrot.slane %v36_v4, 1 }
  0x1e   :  { %v38_v6 = vadd.f32 %v37_v5, %v36_v4 }
  0x20   :  { %v40_v7 = vmul.f32 0.125, %v38_v6 }
  0x22   :  { %v41_v8 = vsub.f32 %v30_v0, %v40_v7 }
  0x24   :  { %v42_v9 = vmul.f32 %v41_v8, %v41_v8 }
  0x26   :  { %v43_v10 = vrot.slane %v42_v9, 4 }
  0x28   :  { %v44_v11 = vadd.f32 %v43_v10, %v42_v9 }
  0x2a   :  { %v45_v12 = vrot.slane %v44_v11, 2 }
  0x2c   :  { %v46_v13 = vadd.f32 %v45_v12, %v44_v11 }
  0x2e   :  { %v47_v15 = vrot.slane %v46_v13, 1 }
  0x30   :  { %v48_v16 = vadd.f32 %v47_v15, %v46_v13 }
  0x32   :  { %v49_v18 = vmul.f32 0.125, %v48_v16 }
  0x34   :  { %v50_v19 = vadd.f32 1e-05, %v49_v18 }
  0x36   :  { %107 = vrsqrt.f32 %v50_v19  ;;  %72 = vst [vmem:[#allocation6] sm:$0x1] %v50_v19 }
  0x37   :  { %142 = shalt.err (!%p139_p12)
}
  0x38   :  { %s143_s7 = scalar_lea.hbm %s255_s4, 16 }
  0x39   :  { %p144_p13 = scmp.ne.s32.totalorder %s255_s4, %s143_s7  ;;  %p147_p0 = scmp.lt.u32.totalorder %s143_s7, %s255_s4 }
  0x3b   :  { %p149_p1 = pnand %p147_p0, %p144_p13 }
  0x3d   :  { %152 = shalt.err (!%p149_p1)
}
  0x3e   :  { %92 = dma.vmem_to_hbm [thread:$0]  %s90_s29, 16, %s255_s4, [#allocation7]   ;;  %v59_v21 = vshrl.u32 %v58_v20, 7  ;;  %v106_v22 = vpop.eup %105  ;;  %v32_v26 = vld [vmem:[%s253_s2] sm:$0x1] }
  0x3f   :  { %s183_s16 = smov [#allocation5]  }
  0x40   :  { %v60_v23 = vsub.s32 0, %v59_v21  ;;  %v108_v24 = vpop.eup %107  ;;  %s79_s17 = sshll.u32 %s183_s16, 4  ;;  %s80_s17 = int_to_ptr.vmem [resolvable:$true] %s79_s17 }
  0x41   :  { %v54_v25 = vmul.f32 %v108_v24, %v106_v22  ;;  %s153_s4 = scalar_lea.vmem %s80_s17, 128  ;;  %p158_p3 = scmp.lt.s32.totalorder %s80_s17, %s80_s17 }
  0x42   :  { %p154_p2 = scmp.ne.s32.totalorder %s80_s17, %s153_s4  ;;  %p159_p4 = scmp.lt.s32.totalorder %s153_s4, %s153_s4 }
  0x43   :  { %v55_v27 = vmul.f32 %v54_v25, %v40_v7  ;;  %v61_v28 = vrot.slane %v54_v25, %v60_v23 }
  0x44   :  { %p160_p5 = por %p159_p4, %p158_p3 }
  0x45   :  { %v56_v29 = vsub.f32 %v32_v26, %v55_v27  ;;  %v63_v30 = vmul.f32 %v61_v28, %v30_v0 }
  0x46   :  { %p161_p6 = pnand %p160_p5, %p154_p2 }
  0x47   :  { %v68_v31 = vrot.slane %v56_v29, %v60_v23 }
  0x49   :  { %v70_v32 = vadd.f32 %v68_v31, %v63_v30 }
  0x4b   :  { %71 = vst [vmem:[#allocation5] sm:$0xff] %v70_v32 }
  0x4c   :  { %164 = shalt.err (!%p161_p6)
}
  0x4d   :  { %s165_s2 = scalar_lea.hbm %s254_s3, 128 }
  0x4e   :  { %p166_p7 = scmp.ne.s32.totalorder %s254_s3, %s165_s2  ;;  %p169_p8 = scmp.lt.u32.totalorder %s165_s2, %s254_s3 }
  0x50   :  { %p171_p9 = pnand %p169_p8, %p166_p7 }
  0x52   :  { %174 = shalt.err (!%p171_p9)
}
  0x53   :  { %82 = dma.vmem_to_hbm [thread:$0]  %s80_s17, 128, %s254_s3, [#allocation4]  }
  0x54   :  { %177 = dma.done.wait [#allocation4], 128  }
  0x55   :  { %178 = vsyncadd [#allocation4], 4294967168 }
  0x56   :  { %179 = dma.done.wait [#allocation7], 16  }
  0x57   :  { %180 = vsyncadd [#allocation7], 4294967280 }
  0x58   :  { %99 = vsyncpa [#allocation3], 1 }
  0x59   :  { %100 = vsyncpa [#allocation4], 1 }
  0x5a   :  { %101 = vsyncpa [#allocation7], 1 }

</bundles_post_ra>
